<compile_context>
chip_gen: v7x
topology: tpu7x:2x2x1
jax: 0.10.0
libtpu: 0.0.40
codegen_flags: <defaults>
</compile_context>

<pallas_src>
import functools

import numpy as np
import jax
import jax.numpy as jnp
from jax.experimental import pallas as pl
from jax.experimental.pallas import tpu as pltpu


# ----------------------------------------------------------------------------
# helpers / global tuning
# ----------------------------------------------------------------------------
def _round_up(x, m):
    return ((x + m - 1) // m) * m


# Largest bf16 weight tile we keep fully VMEM-resident (covers every ResNet-50
# conv and both FC heads; largest is 4608x512 bf16 = 4.7 MiB).
_MAX_RESIDENT_WEIGHT_BYTES = 8 * 1024 * 1024
# VMEM working-set budget used when picking the M tile (safe on v7x's 64 MiB).
_TILE_VMEM_BUDGET = 40 * 1024 * 1024


def _default_vmem_limit_bytes():
    """Generation-aware scoped-VMEM request: ~96 MiB on v5e/v6e (128 MiB
    physical VMEM), ~48 MiB on v7x (64 MiB per TensorCore)."""
    try:
        cap = int(pltpu.get_tpu_info().vmem_capacity_bytes)
        return max(48 * 1024 * 1024, min(cap * 3 // 4, 100 * 1024 * 1024))
    except Exception:
        return 48 * 1024 * 1024


_VMEM_LIMIT_BYTES = _default_vmem_limit_bytes()


# ----------------------------------------------------------------------------
# Pallas kernels: fused matmul + bias (+ residual) (+ ReLU)
# ----------------------------------------------------------------------------
def _matmul_fused_kernel(*refs, apply_relu, has_residual):
    """Single-K-pass (weight-resident) matmul: out = relu?(a@W + bias [+res]).

    No f32 accumulator scratch and no k-phase `pl.when`s -- the full K extent
    is covered by one grid step, so the epilogue runs directly on the dot.
    """
    if has_residual:
        a_ref, b_ref, bias_ref, res_ref, o_ref = refs
    else:
        a_ref, b_ref, bias_ref, o_ref = refs
        res_ref = None
    out = jnp.dot(a_ref[...], b_ref[...], preferred_element_type=jnp.float32)
    out = out + bias_ref[...]
    if res_ref is not None:
        out = out + res_ref[...].astype(jnp.float32)
    if apply_relu:
        out = jnp.maximum(out, 0.0)
    o_ref[...] = out.astype(o_ref.dtype)


def _matmul_fused_acc_kernel(*refs, apply_relu, has_residual):
    """Multi-K fallback (weight too large to keep resident): f32 acc scratch."""
    if has_residual:
        a_ref, b_ref, bias_ref, res_ref, o_ref, acc_ref = refs
    else:
        a_ref, b_ref, bias_ref, o_ref, acc_ref = refs
        res_ref = None

    @pl.when(pl.program_id(2) == 0)
    def _():
        acc_ref[...] = jnp.zeros_like(acc_ref)

    acc_ref[...] += jnp.dot(a_ref[...], b_ref[...],
                            preferred_element_type=jnp.float32)

    @pl.when(pl.program_id(2) == pl.num_programs(2) - 1)
    def _():
        out = acc_ref[...] + bias_ref[...]
        if res_ref is not None:
            out = out + res_ref[...].astype(jnp.float32)
        if apply_relu:
            out = jnp.maximum(out, 0.0)
        o_ref[...] = out.astype(o_ref.dtype)


def prepare_weight(w2d, scale, bias):
    """Fold BN scale into the weight columns, cast to bf16, pad to tile
    multiples and pick tk/tn ONCE at parameter-creation time."""
    K, N = w2d.shape
    w2d = w2d * scale[None, :]                      # fold BN scale into W
    Kp = _round_up(K, 128)
    Np = _round_up(N, 128)
    if Kp * Np * 2 <= _MAX_RESIDENT_WEIGHT_BYTES:
        # Whole weight resident in VMEM: constant B block across the M axis,
        # no K loop -> weight DMA'd from HBM only once per pallas_call.
        tk, tn = Kp, Np
    else:
        tk, tn = 512, 512
        Kp = _round_up(Kp, tk)
        Np = _round_up(Np, tn)
    b_p = jnp.pad(w2d.astype(jnp.bfloat16), ((0, Kp - K), (0, Np - N)))
    bias_p = jnp.pad(bias.astype(jnp.float32), (0, Np - N)).reshape(1, Np)
    return {"b": b_p, "bias": bias_p,
            "K": K, "N": N, "Kp": Kp, "Np": Np, "tk": tk, "tn": tn}


def _pick_tm(M, tk, tn):
    """Largest M tile whose (double-buffered) working set fits the budget."""
    for tm in (512, 256):
        if M < tm:
            continue
        vmem = (2 * tm * tk * 2        # A tile, double-buffered bf16
                + 2 * tk * tn * 2      # weight (conservatively double-buffered)
                + 2 * tm * tn * 2      # output tile
                + 2 * tm * tn * 2      # residual stream (worst case)
                + 2 * tn * 4)          # bias
        if vmem <= _TILE_VMEM_BUDGET:
            return tm
    if M >= 256:
        return 256
    return _round_up(M, 16)


def pallas_matmul(a, wp, relu, residual=None, out_dtype=jnp.bfloat16):
    """out = maybe_relu((a @ W_scaled) + bias [+ residual]).

    a: (M, K) any float dtype (cast to bf16); wp: prepared weight dict.
    residual: optional (M, N) tensor added in the epilogue before ReLU.
    """
    M, K = a.shape
    assert K == wp["K"], (K, wp["K"])
    N = wp["N"]
    Kp, Np, tk, tn = wp["Kp"], wp["Np"], wp["tk"], wp["tn"]

    tm = _pick_tm(M, tk, tn)
    Mp = _round_up(M, tm)

    a = a.astype(jnp.bfloat16)
    if (Mp, Kp) != (M, K):                       # skip no-op pads
        a = jnp.pad(a, ((0, Mp - M), (0, Kp - K)))

    has_res = residual is not None
    if has_res:
        residual = residual.astype(jnp.bfloat16)
        if (Mp, Np) != residual.shape:
            residual = jnp.pad(residual, ((0, Mp - M), (0, Np - N)))

    single_pass = (tk == Kp)
    if single_pass:
        grid = (Mp // tm, Np // tn)
        in_specs = [
            pl.BlockSpec((tm, Kp), lambda i, j: (i, 0)),
            pl.BlockSpec((Kp, tn), lambda i, j: (0, j)),
            pl.BlockSpec((1, tn), lambda i, j: (0, j)),
        ]
        if has_res:
            in_specs.append(pl.BlockSpec((tm, tn), lambda i, j: (i, j)))
        out_spec = pl.BlockSpec((tm, tn), lambda i, j: (i, j))
        kernel = functools.partial(_matmul_fused_kernel,
                                   apply_relu=relu, has_residual=has_res)
        scratch = []
        semantics = ("parallel", "parallel")
    else:
        grid = (Mp // tm, Np // tn, Kp // tk)
        in_specs = [
            pl.BlockSpec((tm, tk), lambda i, j, k: (i, k)),
            pl.BlockSpec((tk, tn), lambda i, j, k: (k, j)),
            pl.BlockSpec((1, tn), lambda i, j, k: (0, j)),
        ]
        if has_res:
            in_specs.append(pl.BlockSpec((tm, tn), lambda i, j, k: (i, j)))
        out_spec = pl.BlockSpec((tm, tn), lambda i, j, k: (i, j))
        kernel = functools.partial(_matmul_fused_acc_kernel,
                                   apply_relu=relu, has_residual=has_res)
        scratch = [pltpu.VMEM((tm, tn), jnp.float32)]
        semantics = ("parallel", "parallel", "arbitrary")

    inputs = [a, wp["b"], wp["bias"]]
    if has_res:
        inputs.append(residual)

    out = pl.pallas_call(
        kernel,
        out_shape=jax.ShapeDtypeStruct((Mp, Np), out_dtype),
        grid_spec=pltpu.PrefetchScalarGridSpec(
            num_scalar_prefetch=0,
            grid=grid,
            in_specs=in_specs,
            out_specs=out_spec,
            scratch_shapes=scratch,
        ),
        compiler_params=pltpu.CompilerParams(
            dimension_semantics=semantics,
            vmem_limit_bytes=_VMEM_LIMIT_BYTES),
    )(*inputs)
    if (Mp, Np) != (M, N):                       # skip no-op slices
        out = out[:M, :N]
    return out


# ----------------------------------------------------------------------------
# Pallas kernel: fused 3x3 stride-1 conv + BN (+ReLU), no im2col in HBM
# ----------------------------------------------------------------------------
def _conv3x3_kernel(x_ref, w_ref, bias_ref, o_ref, *, wp_row, c_in, m_wide,
                    apply_relu):
    """Per-tap accumulation over shifted row-windows of the flattened padded
    image.  x_ref: (1, Hp*Wp, C); w_ref: (9*C, Cout); o_ref: (1, H*Wp, Cout)
    ("wide" output: 2 wrap columns per row are dropped by the wrapper)."""
    xv = x_ref[0]                                   # (Hp*Wp, C)
    cout = o_ref.shape[-1]
    acc = jnp.zeros((m_wide, cout), jnp.float32)
    for i in range(3):
        for j in range(3):
            t = i * 3 + j
            d = i * wp_row + j                      # static row shift
            a_t = xv[d:d + m_wide, :]               # shifted window (M, C)
            w_t = w_ref[t * c_in:(t + 1) * c_in, :]  # aligned tap slice
            acc = acc + jnp.dot(a_t, w_t,
                                preferred_element_type=jnp.float32)
    out = acc + bias_ref[...]
    if apply_relu:
        out = jnp.maximum(out, 0.0)
    o_ref[0] = out.astype(o_ref.dtype)


def conv3x3_s1_fused(x, p, relu):
    """3x3, stride 1, pad 1 conv + folded BN (+ReLU) with in-kernel taps."""
    N, H, W, C = x.shape
    cout = p["cout"]
    assert p["w_tap"].shape == (9 * C, cout)
    Wp = W + 2
    # Pad: 1 top, 2 bottom (the extra bottom row keeps the shifted windows of
    # the two discarded "wrap" columns of the last output row in-bounds),
    # 1 left/right.  Then flatten the spatial dims -> (Hp*Wp, C) per image.
    xp = jnp.pad(x, ((0, 0), (1, 2), (1, 1), (0, 0)))
    hpwp = (H + 3) * Wp
    xf = xp.reshape(N, hpwp, C)
    m_wide = H * Wp

    kernel = functools.partial(_conv3x3_kernel, wp_row=Wp, c_in=C,
                               m_wide=m_wide, apply_relu=relu)
    y = pl.pallas_call(
        kernel,
        out_shape=jax.ShapeDtypeStruct((N, m_wide, cout), jnp.bfloat16),
        grid_spec=pltpu.PrefetchScalarGridSpec(
            num_scalar_prefetch=0,
            grid=(N,),
            in_specs=[
                pl.BlockSpec((1, hpwp, C), lambda n: (n, 0, 0)),
                pl.BlockSpec((9 * C, cout), lambda n: (0, 0)),
                pl.BlockSpec((1, cout), lambda n: (0, 0)),
            ],
            out_specs=pl.BlockSpec((1, m_wide, cout), lambda n: (n, 0, 0)),
        ),
        compiler_params=pltpu.CompilerParams(
            dimension_semantics=("parallel",),
            vmem_limit_bytes=_VMEM_LIMIT_BYTES),
    )(xf, p["w_tap"], p["bias_tap"])
    # Drop the 2 horizontal "wrap" columns produced by the wide formulation.
    return y.reshape(N, H, Wp, cout)[:, :, :W, :]


# ----------------------------------------------------------------------------
# conv / pooling glue
# ----------------------------------------------------------------------------
def _im2col(x, kh, kw, stride, pad):
    """x: NHWC (bf16) -> (N*Ho*Wo, kh*kw*C) patches (kh outer, kw, C inner)."""
    N, H, W, C = x.shape
    xp = jnp.pad(x, ((0, 0), (pad, pad), (pad, pad), (0, 0)))
    Ho = (H + 2 * pad - kh) // stride + 1
    Wo = (W + 2 * pad - kw) // stride + 1
    cols = []
    for i in range(kh):
        for j in range(kw):
            cols.append(xp[:, i:i + stride * Ho:stride,
                           j:j + stride * Wo:stride, :])
    patches = jnp.concatenate(cols, axis=-1)
    return patches.reshape(N * Ho * Wo, kh * kw * C), Ho, Wo


def conv_bn(x, p, stride, relu, residual=None):
    """Conv (no bias) + eval-mode BN (+ residual, + ReLU)."""
    kh, kw, pad = p["kh"], p["kw"], p["pad"]
    n_batch = x.shape[0]
    if "w_tap" in p:                      # fused 3x3 stride-1 path
        assert stride == 1 and pad == 1 and residual is None
        return conv3x3_s1_fused(x, p, relu)
    if kh == 1 and kw == 1 and pad == 0:
        # TODO(synk): the stride-2 1x1 downsample still uses an XLA strided
        #             slice; could be folded into the matmul index_map.
        xs = x[:, ::stride, ::stride, :] if stride > 1 else x
        _, Ho, Wo, C = xs.shape
        patches = xs.reshape(n_batch * Ho * Wo, C)
    else:
        # TODO(synk): 7x7 stem and 3x3 stride-2 convs still materialize
        #             bf16 im2col patches in HBM.
        patches, Ho, Wo = _im2col(x, kh, kw, stride, pad)

    res2d = None
    if residual is not None:
        res2d = residual.reshape(n_batch * Ho * Wo, residual.shape[-1])

    y = pallas_matmul(patches, p["wp"], relu=relu, residual=res2d,
                      out_dtype=jnp.bfloat16)
    return y.reshape(n_batch, Ho, Wo, p["cout"])


def maxpool_3x3_s2(x):
    """3x3 max pool, stride 2, padding 1 (NHWC, bf16), plain-JAX glue."""
    N, H, W, C = x.shape
    xp = jnp.pad(x, ((0, 0), (1, 1), (1, 1), (0, 0)),
                 constant_values=float("-inf"))
    Ho = (H + 2 - 3) // 2 + 1
    Wo = (W + 2 - 3) // 2 + 1
    out = None
    for i in range(3):
        for j in range(3):
            patch = xp[:, i:i + 2 * Ho:2, j:j + 2 * Wo:2, :]
            out = patch if out is None else jnp.maximum(out, patch)
    return out


# ----------------------------------------------------------------------------
# parameters (deterministic synthetic init, shapes from torchvision resnet50)
# ----------------------------------------------------------------------------
def _conv_bn_params(key, kh, kw, cin, cout, pad, stride):
    w = jax.random.normal(key, (kh, kw, cin, cout), jnp.float32)
    w = w * (1.0 / np.sqrt(kh * kw * cin))
    gamma = jnp.ones((cout,), jnp.float32)
    beta = jnp.zeros((cout,), jnp.float32)
    run_mean = jnp.zeros((cout,), jnp.float32)
    run_var = jnp.ones((cout,), jnp.float32)
    eps = 1e-5
    scale = gamma / jnp.sqrt(run_var + eps)
    shift = beta - run_mean * scale

    p = {"kh": kh, "kw": kw, "pad": pad, "cout": cout}
    w2d = w.reshape(kh * kw * cin, cout)
    if kh == 3 and kw == 3 and stride == 1:
        # fused per-tap path: fold scale into weight, keep shift as bias
        p["w_tap"] = (w2d * scale[None, :]).astype(jnp.bfloat16)
        p["bias_tap"] = shift.reshape(1, cout).astype(jnp.float32)
    else:
        p["wp"] = prepare_weight(w2d, scale, shift)
    return p


def make_resnet50_params(num_labels, seed=0):
    root = jax.random.PRNGKey(seed)
    counter = [0]

    def nk():
        counter[0] += 1
        return jax.random.fold_in(root, counter[0])

    params = {}
    params["stem"] = _conv_bn_params(nk(), 7, 7, 3, 64, pad=3, stride=2)

    layers = []
    inplanes = 64
    for planes, nblocks, stride in [(64, 3, 1), (128, 4, 2),
                                    (256, 6, 2), (512, 3, 2)]:
        blocks = []
        for b in range(nblocks):
            s = stride if b == 0 else 1
            bp = {
                "stride": s,
                "conv1": _conv_bn_params(nk(), 1, 1, inplanes, planes, 0, 1),
                "conv2": _conv_bn_params(nk(), 3, 3, planes, planes, 1, s),
                "conv3": _conv_bn_params(nk(), 1, 1, planes, planes * 4, 0, 1),
            }
            if b == 0:  # torchvision: downsample on first block of every layer
                bp["down"] = _conv_bn_params(nk(), 1, 1, inplanes,
                                             planes * 4, 0, s)
            blocks.append(bp)
            inplanes = planes * 4
        layers.append(blocks)
    params["layers"] = layers

    # linear2: 2048 -> 1000 ; linear: 1000 -> num_labels
    w2 = jax.random.normal(nk(), (2048, 1000), jnp.float32) / np.sqrt(2048)
    b2 = 0.01 * jax.random.normal(nk(), (1000,), jnp.float32)
    w1 = jax.random.normal(nk(), (1000, num_labels),
                           jnp.float32) / np.sqrt(1000)
    b1 = 0.01 * jax.random.normal(nk(), (num_labels,), jnp.float32)
    params["fc1"] = prepare_weight(w2, jnp.ones((1000,), jnp.float32), b2)
    params["fc2"] = prepare_weight(w1, jnp.ones((num_labels,), jnp.float32), b1)
    return params


# ----------------------------------------------------------------------------
# forward pass
# ----------------------------------------------------------------------------
def bottleneck(x, bp):
    out = conv_bn(x, bp["conv1"], stride=1, relu=True)               # 1x1
    out = conv_bn(out, bp["conv2"], stride=bp["stride"], relu=True)  # 3x3
    if "down" in bp:
        identity = conv_bn(x, bp["down"], stride=bp["stride"], relu=False)
    else:
        identity = x
    # 1x1 conv + BN + residual add + ReLU, all fused in one kernel epilogue
    return conv_bn(out, bp["conv3"], stride=1, relu=True, residual=identity)


def resnet50_forward(params, x_nchw):
    # PyTorch NCHW -> internal NHWC, bf16 activations throughout the backbone
    x = jnp.transpose(x_nchw, (0, 2, 3, 1)).astype(jnp.bfloat16)

    # stem: conv1 + bn1 + relu + maxpool
    x = conv_bn(x, params["stem"], stride=2, relu=True)
    x = maxpool_3x3_s2(x)

    # layer1..layer4
    for blocks in params["layers"]:
        for bp in blocks:
            x = bottleneck(x, bp)

    # adaptive avg pool to 1x1 + flatten  -> (N, 2048), f32 reduction
    x = jnp.mean(x.astype(jnp.float32), axis=(1, 2))

    # FC heads (epilogue and outputs kept in f32)
    x = pallas_matmul(x, params["fc1"], relu=False,
                      out_dtype=jnp.float32)               # (N, 1000)
    x = pallas_matmul(x, params["fc2"], relu=False,
                      out_dtype=jnp.float32)               # (N, num_labels)
    return x


# ----------------------------------------------------------------------------
if __name__ == "__main__":
    num_labels = 10
    batch = 2
    # ResNet-50 stem requires 3 input channels; 32x32 keeps things small
    # (spatial path: 32 -> 16 -> 8 -> 8 -> 4 -> 2 -> 1).
    x = jax.random.normal(jax.random.PRNGKey(0), (batch, 3, 32, 32),
                          jnp.float32)

    params = make_resnet50_params(num_labels, seed=0)
    out = resnet50_forward(params, x)
    out = jax.block_until_ready(out)

    assert out.shape == (batch, num_labels), out.shape
    assert bool(jnp.all(jnp.isfinite(out)))
    print("KERNEL_OK")
</pallas_src>

<mosaic_0001>
module attributes {stable_mosaic.version = 11 : i64} {
  func.func @_matmul_fused_kernel(%arg0: i32, %arg1: i32, %arg2: memref<512x256xbf16, #tpu.memory_space<vmem>>, %arg3: memref<256x128xbf16, #tpu.memory_space<vmem>>, %arg4: memref<1x128xf32, #tpu.memory_space<vmem>>, %arg5: memref<512x128xbf16, #tpu.memory_space<vmem>>) attributes {dimension_semantics = [#tpu.dimension_semantics<parallel>, #tpu.dimension_semantics<parallel>], iteration_bounds = array<i64: 1, 1>, scalar_prefetch = 0 : i64, scratch_operands = 0 : i64, tpu.core_type = #tpu.core_type<tc>, window_params = [{transform_indices = @transform_0, window_bounds = array<i64: 512, 256>}, {transform_indices = @transform_1, window_bounds = array<i64: 256, 128>}, {transform_indices = @transform_2, window_bounds = array<i64: 1, 128>}, {transform_indices = @transform_3, window_bounds = array<i64: 512, 128>}]} {
    %c0 = arith.constant 0 : index
    %c0_0 = arith.constant 0 : index
    %0 = vector.load %arg2[%c0, %c0_0] : memref<512x256xbf16, #tpu.memory_space<vmem>>, vector<512x256xbf16>
    %c0_1 = arith.constant 0 : index
    %c0_2 = arith.constant 0 : index
    %1 = vector.load %arg3[%c0_1, %c0_2] : memref<256x128xbf16, #tpu.memory_space<vmem>>, vector<256x128xbf16>
    %cst = arith.constant dense<0.000000e+00> : vector<512x128xf32>
    %2 = tpu.matmul %0, %1, %cst {dimension_numbers = #tpu.dot_dimension_numbers<[1], [0], [0], [1], [0, 0, 1, 1], [], []>} : vector<512x256xbf16>, vector<256x128xbf16>, vector<512x128xf32> -> vector<512x128xf32>
    %c0_3 = arith.constant 0 : index
    %c0_4 = arith.constant 0 : index
    %3 = vector.load %arg4[%c0_3, %c0_4] : memref<1x128xf32, #tpu.memory_space<vmem>>, vector<1x128xf32>
    %4 = vector.broadcast %3 : vector<1x128xf32> to vector<512x128xf32>
    %5 = arith.addf %2, %4 : vector<512x128xf32>
    %cst_5 = arith.constant 0.000000e+00 : f32
    %6 = vector.broadcast %cst_5 : f32 to vector<512x128xf32>
    %7 = arith.maximumf %5, %6 : vector<512x128xf32>
    %8 = arith.truncf %7 : vector<512x128xf32> to vector<512x128xbf16>
    %c0_6 = arith.constant 0 : index
    %c0_7 = arith.constant 0 : index
    %9 = vector.load %arg5[%c0_6, %c0_7] : memref<512x128xbf16, #tpu.memory_space<vmem>>, vector<512x128xbf16>
    tpu.vector_store %arg5[%c0_6, %c0_7], %8 {strides = array<i32>} : memref<512x128xbf16, #tpu.memory_space<vmem>>, vector<512x128xbf16>,
    return
  }
  func.func @transform_0(%arg0: i32, %arg1: i32) -> (i32, i32) {
    %c0_i32 = arith.constant 0 : i32
    %c0_i32_0 = arith.constant 0 : i32
    return %arg0, %c0_i32 : i32, i32
  }
  func.func @transform_1(%arg0: i32, %arg1: i32) -> (i32, i32) {
    %c0_i32 = arith.constant 0 : i32
    %c0_i32_0 = arith.constant 0 : i32
    return %c0_i32, %arg1 : i32, i32
  }
  func.func @transform_2(%arg0: i32, %arg1: i32) -> (i32, i32) {
    %c0_i32 = arith.constant 0 : i32
    %c0_i32_0 = arith.constant 0 : i32
    return %c0_i32, %arg1 : i32, i32
  }
  func.func @transform_3(%arg0: i32, %arg1: i32) -> (i32, i32) {
    %c0_i32 = arith.constant 0 : i32
    return %arg0, %arg1 : i32, i32
  }
}

</mosaic_0001>

<bundles_post_ra>
// kernel: tpu_custom_call.1
= control target key start
LH: loop header
LB: loop body
LE: loop exit
PB: predicated region body
PF: predicated region fallthrough
CT: control target
= control target key end

     0   :  { %8 = vsyncpa [#allocation3], 0  ;;  %s2049_s0 = inlined_call_operand.hbm [shape: bf16[512,256], index: 0, kind: input, shape index: {}]   ;;  %s2050_s1 = inlined_call_operand.hbm [shape: bf16[256,128], index: 1, kind: input, shape index: {}]   ;;  %s2051_s2 = inlined_call_operand.vmem [shape: f32[1,128], index: 2, kind: input, shape index: {}]   ;;  %s2052_s3 = inlined_call_operand.hbm [shape: bf16[512,128], index: 3, kind: output, shape index: {}]  }
   0x1   :  { %9 = vsyncpa [#allocation6], 0 }
   0x2   :  { %10 = vsyncpa [#allocation4], 0  ;;  %s1878_s12 = smov [#allocation2]   ;;  %s1806_s16 = scalar_lea.hbm %s2049_s0, 8192 }
   0x3   :  { %s16_s13 = sshll.u32 %s1878_s12, 4  ;;  %p1807_p0 = scmp.ne.s32.totalorder %s2049_s0, %s1806_s16  ;;  %s17_s13 = int_to_ptr.vmem [resolvable:$true] %s16_s13 }
   0x4   :  { %p1810_p1 = scmp.lt.u32.totalorder %s1806_s16, %s2049_s0 }
   0x6   :  { %p1812_p2 = pnand %p1810_p1, %p1807_p0 }
   0x8   :  { %1815 = shalt.err (!%p1812_p2)
}
   0x9   :  { %s1816_s21 = scalar_lea.vmem %s17_s13, 8192  ;;  %p1821_p4 = scmp.lt.s32.totalorder %s17_s13, %s17_s13 }
   0xa   :  { %p1817_p3 = scmp.ne.s32.totalorder %s17_s13, %s1816_s21  ;;  %p1822_p5 = scmp.lt.s32.totalorder %s1816_s21, %s1816_s21 }
   0xc   :  { %p1823_p6 = por %p1822_p5, %p1821_p4 }
   0xe   :  { %p1824_p7 = pnand %p1823_p6, %p1817_p3 }
  0x10   :  { %1827 = shalt.err (!%p1824_p7)
}
  0x11   :  { %s1879_s22 = smov 128   ;;  %s1880_s23 = smov 8  }
  0x12   :  { %22 = dma.hbm_to_vmem [thread:$0]  %s2049_s0, 8192, %s17_s13, [#allocation3], %s1879_s22, %s1879_s22, %s1880_s23  }
  0x13   :  { %s1881_s26 = smov [#allocation5]   ;;  %s1828_s30 = scalar_lea.hbm %s2050_s1, 2048 }
  0x14   :  { %s28_s27 = sshll.u32 %s1881_s26, 4  ;;  %p1829_p8 = scmp.ne.s32.totalorder %s2050_s1, %s1828_s30  ;;  %s29_s27 = int_to_ptr.vmem [resolvable:$true] %s28_s27 }
  0x15   :  { %p1832_p9 = scmp.lt.u32.totalorder %s1828_s30, %s2050_s1 }
  0x17   :  { %p1834_p10 = pnand %p1832_p9, %p1829_p8 }
  0x19   :  { %1837 = shalt.err (!%p1834_p10)
}
  0x1a   :  { %s1838_s8 = scalar_lea.vmem %s29_s27, 2048  ;;  %p1843_p12 = scmp.lt.s32.totalorder %s29_s27, %s29_s27 }
  0x1b   :  { %p1839_p11 = scmp.ne.s32.totalorder %s29_s27, %s1838_s8  ;;  %p1844_p13 = scmp.lt.s32.totalorder %s1838_s8, %s1838_s8 }
  0x1d   :  { %p1845_p0 = por %p1844_p13, %p1843_p12 }
  0x1f   :  { %p1846_p1 = pnand %p1845_p0, %p1839_p11 }
  0x21   :  { %1849 = shalt.err (!%p1846_p1)
}
  0x22   :  { %s1882_s0 = smov 64   ;;  %s1883_s9 = smov 4  }
  0x23   :  { %34 = dma.hbm_to_vmem [thread:$0]  %s2050_s1, 2048, %s29_s27, [#allocation6], %s1882_s0, %s1882_s0, %s1883_s9  }
  0x24   :  { %1872 = dma.done.wait [#allocation3], 8192  }
  0x25   :  { %1873 = vsyncadd [#allocation3], 4294959104 }
  0x26   :  { %1874 = dma.done.wait [#allocation6], 2048  }
  0x27   :  { %1875 = vsyncadd [#allocation6], 4294965248  ;;  %v1884_v0 = vmov 0   ;;  %v1694_v1 = vld [vmem:[#allocation5] sm:$0xff]   ;;  %v1695_v2 = vld [vmem:[#allocation5 + $0x8] sm:$0xff]  }
  0x28   :  { %563 = vmatprep.subr.bf16.mxu0 %v1884_v0  ;;  %1654 = vmatprep.subr.bf16.mxu1 %v1884_v0  ;;  %v1696_v3 = vld [vmem:[#allocation5 + $0x10] sm:$0xff]   ;;  %v1697_v4 = vld [vmem:[#allocation5 + $0x18] sm:$0xff]   ;;  %v1698_v5 = vld [vmem:[#allocation5 + $0x20] sm:$0xff]  }
  0x29   :  { %564 = vmatpush1.bf16.msra.mxu0 %v1694_v1  ;;  %1670 = vmatpush1.bf16.msra.mxu1 %v1694_v1  ;;  %v1712_v6 = vld [vmem:[#allocation2 + $0x4] ss:$8 sps:$4 sm:$0xff]   ;;  %v1700_v9 = vld [vmem:[#allocation5 + $0x30] sm:$0xff]   ;;  %v1701_v10 = vld [vmem:[#allocation5 + $0x38] sm:$0xff]  }
  0x2a   :  { %565 = vmatprep.subr.bf16.mxu0 %v1884_v0  ;;  %1655 = vmatprep.subr.bf16.mxu1 %v1884_v0  ;;  %v1699_v7 = vld [vmem:[#allocation5 + $0x28] sm:$0xff]   ;;  %v1702_v11 = vld [vmem:[#allocation5 + $0x40] sm:$0xff]   ;;  %v1704_v13 = vld [vmem:[#allocation5 + $0x50] sm:$0xff]  }
  0x2b   :  { %v1715_v8 = vld [vmem:[#allocation2 + $0x104] ss:$8 sps:$4 sm:$0xff]   ;;  %595 = vmatprep.mubr.bf16.mxu0 %v1712_v6  ;;  %v1705_v14 = vld [vmem:[#allocation5 + $0x58] sm:$0xff]   ;;  %v1708_v17 = vld [vmem:[#allocation5 + $0x70] sm:$0xff]  }
  0x2c   :  { %723 = vmatprep.mubr.bf16.mxu1 %v1715_v8  ;;  %v1703_v12 = vld [vmem:[#allocation5 + $0x48] sm:$0xff]   ;;  %v1706_v15 = vld [vmem:[#allocation5 + $0x60] sm:$0xff]   ;;  %v1709_v18 = vld [vmem:[#allocation5 + $0x78] sm:$0xff]  }
  0x2d   :  { %566 = vmatpush1.bf16.msra.mxu0 %v1695_v2  ;;  %1671 = vmatpush1.bf16.msra.mxu1 %v1695_v2  ;;  %v1707_v16 = vld [vmem:[#allocation5 + $0x68] sm:$0xff]   ;;  %v1716_v21 = vld [vmem:[#allocation2 + $0x14] ss:$8 sps:$4 sm:$0xff]   ;;  %v1720_v23 = vld [vmem:[#allocation2 + $0x10] ss:$8 sps:$4 sm:$0xff]  }
  0x2e   :  { %567 = vmatprep.subr.bf16.mxu0 %v1884_v0  ;;  %1656 = vmatprep.subr.bf16.mxu1 %v1884_v0  ;;  %v1710_v19 = vld [vmem:[#allocation2] ss:$8 sps:$4 sm:$0xff]   ;;  %v1718_v22 = vld [vmem:[#allocation2 + $0x114] ss:$8 sps:$4 sm:$0xff]   ;;  %v1721_v24 = vld [vmem:[#allocation2 + $0x110] ss:$8 sps:$4 sm:$0xff]  }
  0x2f   :  { %v1713_v20 = vld [vmem:[#allocation2 + $0x100] ss:$8 sps:$4 sm:$0xff]   ;;  %v1722_v25 = vld [vmem:[#allocation2 + $0x24] ss:$8 sps:$4 sm:$0xff]   ;;  %v1728_v29 = vld [vmem:[#allocation2 + $0x34] ss:$8 sps:$4 sm:$0xff]  }
  0x30   :  { %v1724_v26 = vld [vmem:[#allocation2 + $0x124] ss:$8 sps:$4 sm:$0xff]   ;;  %v1726_v27 = vld [vmem:[#allocation2 + $0x20] ss:$8 sps:$4 sm:$0xff]   ;;  %v1730_v30 = vld [vmem:[#allocation2 + $0x134] ss:$8 sps:$4 sm:$0xff]  }
  0x31   :  { %568 = vmatpush1.bf16.msra.mxu0 %v1696_v3  ;;  %1672 = vmatpush1.bf16.msra.mxu1 %v1696_v3  ;;  %v1727_v28 = vld [vmem:[#allocation2 + $0x120] ss:$8 sps:$4 sm:$0xff]   ;;  %v1732_v31 = vld [vmem:[#allocation2 + $0x30] ss:$8 sps:$4 sm:$0xff]   ;;  %v1734_v33 = vld [vmem:[#allocation2 + $0x44] ss:$8 sps:$4 sm:$0xff]  }
  0x32   :  { %569 = vmatprep.subr.bf16.mxu0 %v1884_v0  ;;  %1657 = vmatprep.subr.bf16.mxu1 %v1884_v0  ;;  %v1733_v32 = vld [vmem:[#allocation2 + $0x130] ss:$8 sps:$4 sm:$0xff]   ;;  %v1736_v34 = vld [vmem:[#allocation2 + $0x144] ss:$8 sps:$4 sm:$0xff]   ;;  %v1738_v35 = vld [vmem:[#allocation2 + $0x40] ss:$8 sps:$4 sm:$0xff]  }
  0x33   :  { %v1739_v36 = vld [vmem:[#allocation2 + $0x140] ss:$8 sps:$4 sm:$0xff]   ;;  %v1740_v37 = vld [vmem:[#allocation2 + $0x54] ss:$8 sps:$4 sm:$0xff]   ;;  %v1744_v39 = vld [vmem:[#allocation2 + $0x50] ss:$8 sps:$4 sm:$0xff]  }
  0x34   :  { %v1742_v38 = vld [vmem:[#allocation2 + $0x154] ss:$8 sps:$4 sm:$0xff]   ;;  %v1745_v40 = vld [vmem:[#allocation2 + $0x150] ss:$8 sps:$4 sm:$0xff]   ;;  %v1746_v41 = vld [vmem:[#allocation2 + $0x64] ss:$8 sps:$4 sm:$0xff]  }
  0x35   :  { %570 = vmatpush1.bf16.msra.mxu0 %v1697_v4  ;;  %1673 = vmatpush1.bf16.msra.mxu1 %v1697_v4  ;;  %v1748_v42 = vld [vmem:[#allocation2 + $0x164] ss:$8 sps:$4 sm:$0xff]   ;;  %v1750_v43 = vld [vmem:[#allocation2 + $0x60] ss:$8 sps:$4 sm:$0xff]   ;;  %v1752_v45 = vld [vmem:[#allocation2 + $0x74] ss:$8 sps:$4 sm:$0xff]  }
  0x36   :  { %571 = vmatprep.subr.bf16.mxu0 %v1884_v0  ;;  %1658 = vmatprep.subr.bf16.mxu1 %v1884_v0  ;;  %v1751_v44 = vld [vmem:[#allocation2 + $0x160] ss:$8 sps:$4 sm:$0xff]   ;;  %v1754_v46 = vld [vmem:[#allocation2 + $0x174] ss:$8 sps:$4 sm:$0xff]   ;;  %v1756_v47 = vld [vmem:[#allocation2 + $0x70] ss:$8 sps:$4 sm:$0xff]  }
  0x37   :  { %v1757_v48 = vld [vmem:[#allocation2 + $0x170] ss:$8 sps:$4 sm:$0xff]   ;;  %v1758_v49 = vld [vmem:[#allocation2 + $0x84] ss:$8 sps:$4 sm:$0xff]   ;;  %v1762_v51 = vld [vmem:[#allocation2 + $0x80] ss:$8 sps:$4 sm:$0xff]  }
  0x38   :  { %v1760_v50 = vld [vmem:[#allocation2 + $0x184] ss:$8 sps:$4 sm:$0xff]   ;;  %v1763_v52 = vld [vmem:[#allocation2 + $0x180] ss:$8 sps:$4 sm:$0xff]   ;;  %v1764_v53 = vld [vmem:[#allocation2 + $0x94] ss:$8 sps:$4 sm:$0xff]  }
  0x39   :  { %572 = vmatpush1.bf16.msra.mxu0 %v1698_v5  ;;  %1674 = vmatpush1.bf16.msra.mxu1 %v1698_v5  ;;  %v1766_v54 = vld [vmem:[#allocation2 + $0x194] ss:$8 sps:$4 sm:$0xff]   ;;  %v1768_v55 = vld [vmem:[#allocation2 + $0x90] ss:$8 sps:$4 sm:$0xff]   ;;  %v1770_v57 = vld [vmem:[#allocation2 + $0xa4] ss:$8 sps:$4 sm:$0xff]  }
  0x3a   :  { %573 = vmatprep.subr.bf16.mxu0 %v1884_v0  ;;  %1659 = vmatprep.subr.bf16.mxu1 %v1884_v0  ;;  %v1769_v56 = vld [vmem:[#allocation2 + $0x190] ss:$8 sps:$4 sm:$0xff]   ;;  %v1772_v58 = vld [vmem:[#allocation2 + $0x1a4] ss:$8 sps:$4 sm:$0xff]   ;;  %v1774_v59 = vld [vmem:[#allocation2 + $0xa0] ss:$8 sps:$4 sm:$0xff]  }
  0x3b   :  { %v1775_v60 = vld [vmem:[#allocation2 + $0x1a0] ss:$8 sps:$4 sm:$0xff]   ;;  %v1776_v61 = vld [vmem:[#allocation2 + $0xb4] ss:$8 sps:$4 sm:$0xff]   ;;  %v1780_v63 = vld [vmem:[#allocation2 + $0xb0] ss:$8 sps:$4 sm:$0xff]  }
  0x3c   :  { %v1778_v62 = vld [vmem:[#allocation2 + $0x1b4] ss:$8 sps:$4 sm:$0xff]   ;;  %v1782_v1 = vld [vmem:[#allocation2 + $0xc4] ss:$8 sps:$4 sm:$0xff]   ;;  %v1786_v3 = vld [vmem:[#allocation2 + $0xc0] ss:$8 sps:$4 sm:$0xff]  }
  0x3d   :  { %574 = vmatpush1.bf16.msra.mxu0 %v1699_v7  ;;  %1675 = vmatpush1.bf16.msra.mxu1 %v1699_v7  ;;  %v1784_v2 = vld [vmem:[#allocation2 + $0x1c4] ss:$8 sps:$4 sm:$0xff]   ;;  %v1787_v4 = vld [vmem:[#allocation2 + $0x1c0] ss:$8 sps:$4 sm:$0xff]   ;;  %v1788_v5 = vld [vmem:[#allocation2 + $0xd4] ss:$8 sps:$4 sm:$0xff]  }
  0x3e   :  { %575 = vmatprep.subr.bf16.mxu0 %v1884_v0  ;;  %1660 = vmatprep.subr.bf16.mxu1 %v1884_v0  ;;  %v1790_v6 = vld [vmem:[#allocation2 + $0x1d4] ss:$8 sps:$4 sm:$0xff]   ;;  %v1792_v7 = vld [vmem:[#allocation2 + $0xd0] ss:$8 sps:$4 sm:$0xff]  }
  0x3f   :  { %v1793_v8 = vld [vmem:[#allocation2 + $0x1d0] ss:$8 sps:$4 sm:$0xff]  }
  0x41   :  { %576 = vmatpush1.bf16.msra.mxu0 %v1700_v9  ;;  %1676 = vmatpush1.bf16.msra.mxu1 %v1700_v9  ;;  %v1794_v9 = vld [vmem:[#allocation2 + $0xe4] ss:$8 sps:$4 sm:$0xff]  }
  0x42   :  { %577 = vmatprep.subr.bf16.mxu0 %v1884_v0  ;;  %1661 = vmatprep.subr.bf16.mxu1 %v1884_v0 }
  0x45   :  { %578 = vmatpush1.bf16.msra.mxu0 %v1701_v10  ;;  %1677 = vmatpush1.bf16.msra.mxu1 %v1701_v10  ;;  %v1796_v10 = vld [vmem:[#allocation2 + $0x1e4] ss:$8 sps:$4 sm:$0xff]  }
  0x46   :  { %579 = vmatprep.subr.bf16.mxu0 %v1884_v0  ;;  %1662 = vmatprep.subr.bf16.mxu1 %v1884_v0 }
  0x49   :  { %580 = vmatpush1.bf16.msra.mxu0 %v1702_v11  ;;  %1678 = vmatpush1.bf16.msra.mxu1 %v1702_v11  ;;  %v1798_v11 = vld [vmem:[#allocation2 + $0xe0] ss:$8 sps:$4 sm:$0xff]  }
  0x4a   :  { %581 = vmatprep.subr.bf16.mxu0 %v1884_v0  ;;  %1663 = vmatprep.subr.bf16.mxu1 %v1884_v0 }
  0x4d   :  { %582 = vmatpush1.bf16.msra.mxu0 %v1703_v12  ;;  %1679 = vmatpush1.bf16.msra.mxu1 %v1703_v12  ;;  %v1799_v12 = vld [vmem:[#allocation2 + $0x1e0] ss:$8 sps:$4 sm:$0xff]  }
  0x4e   :  { %583 = vmatprep.subr.bf16.mxu0 %v1884_v0  ;;  %1664 = vmatprep.subr.bf16.mxu1 %v1884_v0 }
  0x51   :  { %584 = vmatpush1.bf16.msra.mxu0 %v1704_v13  ;;  %1680 = vmatpush1.bf16.msra.mxu1 %v1704_v13  ;;  %v1800_v13 = vld [vmem:[#allocation2 + $0xf4] ss:$8 sps:$4 sm:$0xff]  }
  0x52   :  { %585 = vmatprep.subr.bf16.mxu0 %v1884_v0  ;;  %1665 = vmatprep.subr.bf16.mxu1 %v1884_v0 }
  0x55   :  { %586 = vmatpush1.bf16.msra.mxu0 %v1705_v14  ;;  %1681 = vmatpush1.bf16.msra.mxu1 %v1705_v14  ;;  %v1802_v14 = vld [vmem:[#allocation2 + $0x1f4] ss:$8 sps:$4 sm:$0xff]  }
  0x56   :  { %587 = vmatprep.subr.bf16.mxu0 %v1884_v0  ;;  %1666 = vmatprep.subr.bf16.mxu1 %v1884_v0 }
  0x59   :  { %588 = vmatpush1.bf16.msra.mxu0 %v1706_v15  ;;  %1682 = vmatpush1.bf16.msra.mxu1 %v1706_v15  ;;  %v1804_v15 = vld [vmem:[#allocation2 + $0xf0] ss:$8 sps:$4 sm:$0xff]  }
  0x5a   :  { %589 = vmatprep.subr.bf16.mxu0 %v1884_v0  ;;  %1667 = vmatprep.subr.bf16.mxu1 %v1884_v0 }
  0x5d   :  { %590 = vmatpush1.bf16.msra.mxu0 %v1707_v16  ;;  %1683 = vmatpush1.bf16.msra.mxu1 %v1707_v16  ;;  %v1805_v16 = vld [vmem:[#allocation2 + $0x1f0] ss:$8 sps:$4 sm:$0xff]  }
  0x5e   :  { %591 = vmatprep.subr.bf16.mxu0 %v1884_v0  ;;  %1668 = vmatprep.subr.bf16.mxu1 %v1884_v0 }
  0x61   :  { %592 = vmatpush1.bf16.msra.mxu0 %v1708_v17  ;;  %1684 = vmatpush1.bf16.msra.mxu1 %v1708_v17  ;;  %v1968_v17 = vld [vmem:[%s2051_s2] ss:$0 sm:$0xff]  ;;  %s1885_s2 = smov [#allocation7]  }
  0x62   :  { %593 = vmatprep.subr.bf16.mxu0 %v1884_v0  ;;  %1669 = vmatprep.subr.bf16.mxu1 %v1884_v0  ;;  %v1781_v0 = vld [vmem:[#allocation2 + $0x1b0] ss:$8 sps:$4 sm:$0xff]   ;;  %s1241_s13 = sshll.u32 %s1885_s2, 4  ;;  %s1242_s13 = int_to_ptr.vmem [resolvable:$true] %s1241_s13 }
  0x63   :  { %s1850_s14 = scalar_lea.vmem %s1242_s13, 4096  ;;  %p1855_p3 = scmp.lt.s32.totalorder %s1242_s13, %s1242_s13 }
  0x64   :  { %p1851_p2 = scmp.ne.s32.totalorder %s1242_s13, %s1850_s14  ;;  %p1856_p4 = scmp.lt.s32.totalorder %s1850_s14, %s1850_s14 }
  0x65   :  { %594 = vmatpush1.bf16.msra.mxu0 %v1709_v18  ;;  %1685 = vmatpush1.bf16.msra.mxu1 %v1709_v18 }
  0x66   :  { %p1857_p5 = por %p1856_p4, %p1855_p3 }
  0x68   :  { %596 = vmatmul.mubr.bf16.vlgmr.msra.gmra.mrb[0].mxu0 %v1710_v19  ;;  %724 = vmatmul.mubr.bf16.vlgmr.msra.gmra.mrb[0].mxu1 %v1713_v20  ;;  %p1858_p6 = pnand %p1857_p5, %p1851_p2 }
  0x69   :  { %603 = vmatprep.mubr.bf16.mxu0 %v1716_v21  ;;  %731 = vmatprep.mubr.bf16.mxu1 %v1718_v22 }
  0x70   :  { %604 = vmatmul.mubr.bf16.gmra.mrb[4].mxu0 %v1720_v23  ;;  %732 = vmatmul.mubr.bf16.gmra.mrb[4].mxu1 %v1721_v24 }
  0x71   :  { %611 = vmatprep.mubr.bf16.mxu0 %v1722_v25  ;;  %739 = vmatprep.mubr.bf16.mxu1 %v1724_v26 }
  0x78   :  { %612 = vmatmul.mubr.bf16.gmra.mrb[8].mxu0 %v1726_v27  ;;  %740 = vmatmul.mubr.bf16.gmra.mrb[8].mxu1 %v1727_v28 }
  0x79   :  { %619 = vmatprep.mubr.bf16.mxu0 %v1728_v29  ;;  %747 = vmatprep.mubr.bf16.mxu1 %v1730_v30 }
  0x80   :  { %620 = vmatmul.mubr.bf16.gmra.mrb[12].mxu0 %v1732_v31  ;;  %748 = vmatmul.mubr.bf16.gmra.mrb[12].mxu1 %v1733_v32 }
  0x81   :  { %627 = vmatprep.mubr.bf16.mxu0 %v1734_v33  ;;  %755 = vmatprep.mubr.bf16.mxu1 %v1736_v34 }
  0x88   :  { %628 = vmatmul.mubr.bf16.gmra.mrb[16].mxu0 %v1738_v35  ;;  %756 = vmatmul.mubr.bf16.gmra.mrb[16].mxu1 %v1739_v36 }
  0x89   :  { %635 = vmatprep.mubr.bf16.mxu0 %v1740_v37  ;;  %763 = vmatprep.mubr.bf16.mxu1 %v1742_v38 }
  0x90   :  { %636 = vmatmul.mubr.bf16.gmra.mrb[20].mxu0 %v1744_v39  ;;  %764 = vmatmul.mubr.bf16.gmra.mrb[20].mxu1 %v1745_v40 }
  0x91   :  { %643 = vmatprep.mubr.bf16.mxu0 %v1746_v41  ;;  %771 = vmatprep.mubr.bf16.mxu1 %v1748_v42 }
  0x98   :  { %644 = vmatmul.mubr.bf16.gmra.mrb[24].mxu0 %v1750_v43  ;;  %772 = vmatmul.mubr.bf16.gmra.mrb[24].mxu1 %v1751_v44 }
  0x99   :  { %651 = vmatprep.mubr.bf16.mxu0 %v1752_v45  ;;  %779 = vmatprep.mubr.bf16.mxu1 %v1754_v46 }
  0xa0   :  { %652 = vmatmul.mubr.bf16.gmra.mrb[28].mxu0 %v1756_v47  ;;  %780 = vmatmul.mubr.bf16.gmra.mrb[28].mxu1 %v1757_v48 }
  0xa1   :  { %659 = vmatprep.mubr.bf16.mxu0 %v1758_v49  ;;  %787 = vmatprep.mubr.bf16.mxu1 %v1760_v50 }
  0xa8   :  { %660 = vmatmul.mubr.bf16.gmra.mrb[32].mxu0 %v1762_v51  ;;  %788 = vmatmul.mubr.bf16.gmra.mrb[32].mxu1 %v1763_v52 }
  0xa9   :  { %667 = vmatprep.mubr.bf16.mxu0 %v1764_v53  ;;  %795 = vmatprep.mubr.bf16.mxu1 %v1766_v54 }
  0xb0   :  { %668 = vmatmul.mubr.bf16.gmra.mrb[36].mxu0 %v1768_v55  ;;  %796 = vmatmul.mubr.bf16.gmra.mrb[36].mxu1 %v1769_v56 }
  0xb1   :  { %675 = vmatprep.mubr.bf16.mxu0 %v1770_v57  ;;  %803 = vmatprep.mubr.bf16.mxu1 %v1772_v58 }
  0xb8   :  { %676 = vmatmul.mubr.bf16.gmra.mrb[40].mxu0 %v1774_v59  ;;  %804 = vmatmul.mubr.bf16.gmra.mrb[40].mxu1 %v1775_v60 }
  0xb9   :  { %683 = vmatprep.mubr.bf16.mxu0 %v1776_v61  ;;  %811 = vmatprep.mubr.bf16.mxu1 %v1778_v62 }
  0xc0   :  { %684 = vmatmul.mubr.bf16.gmra.mrb[44].mxu0 %v1780_v63  ;;  %812 = vmatmul.mubr.bf16.gmra.mrb[44].mxu1 %v1781_v0 }
  0xc1   :  { %691 = vmatprep.mubr.bf16.mxu0 %v1782_v1  ;;  %819 = vmatprep.mubr.bf16.mxu1 %v1784_v2 }
  0xc8   :  { %692 = vmatmul.mubr.bf16.gmra.mrb[48].mxu0 %v1786_v3  ;;  %820 = vmatmul.mubr.bf16.gmra.mrb[48].mxu1 %v1787_v4 }
  0xc9   :  { %699 = vmatprep.mubr.bf16.mxu0 %v1788_v5  ;;  %827 = vmatprep.mubr.bf16.mxu1 %v1790_v6 }
  0xd0   :  { %700 = vmatmul.mubr.bf16.gmra.mrb[52].mxu0 %v1792_v7  ;;  %828 = vmatmul.mubr.bf16.gmra.mrb[52].mxu1 %v1793_v8 }
  0xd1   :  { %707 = vmatprep.mubr.bf16.mxu0 %v1794_v9  ;;  %835 = vmatprep.mubr.bf16.mxu1 %v1796_v10 }
  0xd8   :  { %708 = vmatmul.mubr.bf16.gmra.mrb[56].mxu0 %v1798_v11  ;;  %836 = vmatmul.mubr.bf16.gmra.mrb[56].mxu1 %v1799_v12 }
  0xd9   :  { %715 = vmatprep.mubr.bf16.mxu0 %v1800_v13  ;;  %843 = vmatprep.mubr.bf16.mxu1 %v1802_v14 }
  0xe0   :  { %716 = vmatmul.mubr.bf16.gmra.mrb[60].mxu0 %v1804_v15  ;;  %844 = vmatmul.mubr.bf16.gmra.mrb[60].mxu1 %v1805_v16 }
 0x13b   :  { %v597_v18 = vpop.f32.mrb[0].mxu0  ;;  %v725_v19 = vpop.f32.mrb[0].mxu1 }
 0x13c   :  { %v598_v20 = vadd.f32 %v1968_v17, %v597_v18  ;;  %v726_v21 = vadd.f32 %v1968_v17, %v725_v19  ;;  %v599_v22 = vpop.f32.mrb[1].mxu0  ;;  %v727_v23 = vpop.f32.mrb[1].mxu1 }
 0x13d   :  { %v600_v24 = vpop.f32.mrb[2].mxu0  ;;  %v728_v25 = vpop.f32.mrb[2].mxu1 }
 0x13e   :  { %v601_v26 = vadd.f32 %v1968_v17, %v600_v24  ;;  %v729_v27 = vadd.f32 %v1968_v17, %v728_v25  ;;  %v602_v28 = vpop.f32.mrb[3].mxu0  ;;  %v730_v29 = vpop.f32.mrb[3].mxu1  ;;  %v852_v30 = vmax.f32 %v598_v20, 0.0  ;;  %v884_v31 = vmax.f32 %v726_v21, 0.0 }
 0x140   :  { %v853_v32 = vmax.f32 %v601_v26, 0.0  ;;  %v885_v33 = vmax.f32 %v729_v27, 0.0 }
 0x142   :  { %v1466_v34 = vpack.c.bf16 %v853_v32, %v852_v30  ;;  %v1546_v35 = vpack.c.bf16 %v885_v33, %v884_v31 }
 0x143   :  { %v605_v36 = vpop.f32.mrb[4].mxu0  ;;  %v733_v37 = vpop.f32.mrb[4].mxu1 }
 0x144   :  { %1467 = vst [vmem:[#allocation7] sm:$0xff] %v1466_v34   ;;  %1638 = vst [vmem:[#allocation7 + $0x80] sm:$0xff] %v1546_v35   ;;  %v606_v38 = vadd.f32 %v1968_v17, %v605_v36  ;;  %v734_v39 = vadd.f32 %v1968_v17, %v733_v37  ;;  %v607_v40 = vpop.f32.mrb[5].mxu0  ;;  %v735_v41 = vpop.f32.mrb[5].mxu1 }
 0x145   :  { %v608_v42 = vpop.f32.mrb[6].mxu0  ;;  %v736_v43 = vpop.f32.mrb[6].mxu1 }
 0x146   :  { %v609_v44 = vadd.f32 %v1968_v17, %v608_v42  ;;  %v737_v45 = vadd.f32 %v1968_v17, %v736_v43  ;;  %v610_v46 = vpop.f32.mrb[7].mxu0  ;;  %v738_v47 = vpop.f32.mrb[7].mxu1  ;;  %v854_v48 = vmax.f32 %v606_v38, 0.0  ;;  %v886_v49 = vmax.f32 %v734_v39, 0.0 }
 0x148   :  { %v855_v50 = vmax.f32 %v609_v44, 0.0  ;;  %v887_v51 = vmax.f32 %v737_v45, 0.0 }
 0x14a   :  { %v1471_v52 = vpack.c.bf16 %v855_v50, %v854_v48  ;;  %v1551_v53 = vpack.c.bf16 %v887_v51, %v886_v49 }
 0x14b   :  { %v613_v54 = vpop.f32.mrb[8].mxu0  ;;  %v741_v55 = vpop.f32.mrb[8].mxu1 }
 0x14c   :  { %1623 = vst [vmem:[#allocation7 + $0x8] sm:$0xff] %v1471_v52   ;;  %1639 = vst [vmem:[#allocation7 + $0x88] sm:$0xff] %v1551_v53   ;;  %v614_v56 = vadd.f32 %v1968_v17, %v613_v54  ;;  %v742_v57 = vadd.f32 %v1968_v17, %v741_v55  ;;  %v615_v58 = vpop.f32.mrb[9].mxu0  ;;  %v743_v59 = vpop.f32.mrb[9].mxu1 }
 0x14d   :  { %v616_v60 = vpop.f32.mrb[10].mxu0  ;;  %v744_v61 = vpop.f32.mrb[10].mxu1 }
 0x14e   :  { %v617_v62 = vadd.f32 %v1968_v17, %v616_v60  ;;  %v745_v63 = vadd.f32 %v1968_v17, %v744_v61  ;;  %v618_v0 = vpop.f32.mrb[11].mxu0  ;;  %v746_v1 = vpop.f32.mrb[11].mxu1  ;;  %v856_v2 = vmax.f32 %v614_v56, 0.0  ;;  %v888_v3 = vmax.f32 %v742_v57, 0.0 }
 0x150   :  { %v857_v4 = vmax.f32 %v617_v62, 0.0  ;;  %v889_v5 = vmax.f32 %v745_v63, 0.0 }
 0x152   :  { %v1476_v6 = vpack.c.bf16 %v857_v4, %v856_v2  ;;  %v1556_v7 = vpack.c.bf16 %v889_v5, %v888_v3 }
 0x153   :  { %v621_v8 = vpop.f32.mrb[12].mxu0  ;;  %v749_v9 = vpop.f32.mrb[12].mxu1 }
 0x154   :  { %1624 = vst [vmem:[#allocation7 + $0x10] sm:$0xff] %v1476_v6   ;;  %1640 = vst [vmem:[#allocation7 + $0x90] sm:$0xff] %v1556_v7   ;;  %v622_v10 = vadd.f32 %v1968_v17, %v621_v8  ;;  %v750_v11 = vadd.f32 %v1968_v17, %v749_v9  ;;  %v623_v12 = vpop.f32.mrb[13].mxu0  ;;  %v751_v13 = vpop.f32.mrb[13].mxu1 }
 0x155   :  { %v624_v14 = vpop.f32.mrb[14].mxu0  ;;  %v752_v15 = vpop.f32.mrb[14].mxu1 }
 0x156   :  { %v625_v16 = vadd.f32 %v1968_v17, %v624_v14  ;;  %v753_v18 = vadd.f32 %v1968_v17, %v752_v15  ;;  %v626_v19 = vpop.f32.mrb[15].mxu0  ;;  %v754_v20 = vpop.f32.mrb[15].mxu1  ;;  %v858_v21 = vmax.f32 %v622_v10, 0.0  ;;  %v890_v22 = vmax.f32 %v750_v11, 0.0 }
 0x158   :  { %v859_v23 = vmax.f32 %v625_v16, 0.0  ;;  %v891_v24 = vmax.f32 %v753_v18, 0.0 }
 0x15a   :  { %v1481_v25 = vpack.c.bf16 %v859_v23, %v858_v21  ;;  %v1561_v26 = vpack.c.bf16 %v891_v24, %v890_v22 }
 0x15b   :  { %v629_v27 = vpop.f32.mrb[16].mxu0  ;;  %v757_v28 = vpop.f32.mrb[16].mxu1 }
 0x15c   :  { %1625 = vst [vmem:[#allocation7 + $0x18] sm:$0xff] %v1481_v25   ;;  %1641 = vst [vmem:[#allocation7 + $0x98] sm:$0xff] %v1561_v26   ;;  %v630_v29 = vadd.f32 %v1968_v17, %v629_v27  ;;  %v758_v30 = vadd.f32 %v1968_v17, %v757_v28  ;;  %v631_v31 = vpop.f32.mrb[17].mxu0  ;;  %v759_v32 = vpop.f32.mrb[17].mxu1 }
 0x15d   :  { %v632_v33 = vpop.f32.mrb[18].mxu0  ;;  %v760_v34 = vpop.f32.mrb[18].mxu1 }
 0x15e   :  { %v633_v35 = vadd.f32 %v1968_v17, %v632_v33  ;;  %v761_v36 = vadd.f32 %v1968_v17, %v760_v34  ;;  %v634_v37 = vpop.f32.mrb[19].mxu0  ;;  %v762_v38 = vpop.f32.mrb[19].mxu1  ;;  %v860_v39 = vmax.f32 %v630_v29, 0.0  ;;  %v892_v40 = vmax.f32 %v758_v30, 0.0 }
 0x160   :  { %v861_v41 = vmax.f32 %v633_v35, 0.0  ;;  %v893_v42 = vmax.f32 %v761_v36, 0.0 }
 0x162   :  { %v1486_v43 = vpack.c.bf16 %v861_v41, %v860_v39  ;;  %v1566_v44 = vpack.c.bf16 %v893_v42, %v892_v40 }
 0x163   :  { %v637_v45 = vpop.f32.mrb[20].mxu0  ;;  %v765_v46 = vpop.f32.mrb[20].mxu1 }
 0x164   :  { %1626 = vst [vmem:[#allocation7 + $0x20] sm:$0xff] %v1486_v43   ;;  %1642 = vst [vmem:[#allocation7 + $0xa0] sm:$0xff] %v1566_v44   ;;  %v638_v47 = vadd.f32 %v1968_v17, %v637_v45  ;;  %v766_v48 = vadd.f32 %v1968_v17, %v765_v46  ;;  %v639_v49 = vpop.f32.mrb[21].mxu0  ;;  %v767_v50 = vpop.f32.mrb[21].mxu1 }
 0x165   :  { %v640_v51 = vpop.f32.mrb[22].mxu0  ;;  %v768_v52 = vpop.f32.mrb[22].mxu1 }
 0x166   :  { %v641_v53 = vadd.f32 %v1968_v17, %v640_v51  ;;  %v769_v54 = vadd.f32 %v1968_v17, %v768_v52  ;;  %v642_v55 = vpop.f32.mrb[23].mxu0  ;;  %v770_v56 = vpop.f32.mrb[23].mxu1  ;;  %v862_v57 = vmax.f32 %v638_v47, 0.0  ;;  %v894_v58 = vmax.f32 %v766_v48, 0.0 }
 0x168   :  { %v863_v59 = vmax.f32 %v641_v53, 0.0  ;;  %v895_v60 = vmax.f32 %v769_v54, 0.0 }
 0x16a   :  { %v1491_v61 = vpack.c.bf16 %v863_v59, %v862_v57  ;;  %v1571_v62 = vpack.c.bf16 %v895_v60, %v894_v58 }
 0x16b   :  { %v645_v63 = vpop.f32.mrb[24].mxu0  ;;  %v773_v0 = vpop.f32.mrb[24].mxu1 }
 0x16c   :  { %1627 = vst [vmem:[#allocation7 + $0x28] sm:$0xff] %v1491_v61   ;;  %1643 = vst [vmem:[#allocation7 + $0xa8] sm:$0xff] %v1571_v62   ;;  %v646_v1 = vadd.f32 %v1968_v17, %v645_v63  ;;  %v774_v2 = vadd.f32 %v1968_v17, %v773_v0  ;;  %v647_v3 = vpop.f32.mrb[25].mxu0  ;;  %v775_v4 = vpop.f32.mrb[25].mxu1 }
 0x16d   :  { %v648_v5 = vpop.f32.mrb[26].mxu0  ;;  %v776_v6 = vpop.f32.mrb[26].mxu1 }
 0x16e   :  { %v649_v7 = vadd.f32 %v1968_v17, %v648_v5  ;;  %v777_v8 = vadd.f32 %v1968_v17, %v776_v6  ;;  %v650_v9 = vpop.f32.mrb[27].mxu0  ;;  %v778_v10 = vpop.f32.mrb[27].mxu1  ;;  %v864_v11 = vmax.f32 %v646_v1, 0.0  ;;  %v896_v12 = vmax.f32 %v774_v2, 0.0 }
 0x170   :  { %v865_v13 = vmax.f32 %v649_v7, 0.0  ;;  %v897_v14 = vmax.f32 %v777_v8, 0.0 }
 0x172   :  { %v1496_v15 = vpack.c.bf16 %v865_v13, %v864_v11  ;;  %v1576_v16 = vpack.c.bf16 %v897_v14, %v896_v12 }
 0x173   :  { %v653_v18 = vpop.f32.mrb[28].mxu0  ;;  %v781_v19 = vpop.f32.mrb[28].mxu1 }
 0x174   :  { %1628 = vst [vmem:[#allocation7 + $0x30] sm:$0xff] %v1496_v15   ;;  %1644 = vst [vmem:[#allocation7 + $0xb0] sm:$0xff] %v1576_v16   ;;  %v654_v20 = vadd.f32 %v1968_v17, %v653_v18  ;;  %v782_v21 = vadd.f32 %v1968_v17, %v781_v19  ;;  %v655_v22 = vpop.f32.mrb[29].mxu0  ;;  %v783_v23 = vpop.f32.mrb[29].mxu1 }
 0x175   :  { %v656_v24 = vpop.f32.mrb[30].mxu0  ;;  %v784_v25 = vpop.f32.mrb[30].mxu1 }
 0x176   :  { %v657_v26 = vadd.f32 %v1968_v17, %v656_v24  ;;  %v785_v27 = vadd.f32 %v1968_v17, %v784_v25  ;;  %v658_v28 = vpop.f32.mrb[31].mxu0  ;;  %v786_v29 = vpop.f32.mrb[31].mxu1  ;;  %v866_v30 = vmax.f32 %v654_v20, 0.0  ;;  %v898_v31 = vmax.f32 %v782_v21, 0.0 }
 0x178   :  { %v867_v32 = vmax.f32 %v657_v26, 0.0  ;;  %v899_v33 = vmax.f32 %v785_v27, 0.0 }
 0x17a   :  { %v1501_v34 = vpack.c.bf16 %v867_v32, %v866_v30  ;;  %v1581_v35 = vpack.c.bf16 %v899_v33, %v898_v31 }
 0x17b   :  { %v661_v36 = vpop.f32.mrb[32].mxu0  ;;  %v789_v37 = vpop.f32.mrb[32].mxu1 }
 0x17c   :  { %1629 = vst [vmem:[#allocation7 + $0x38] sm:$0xff] %v1501_v34   ;;  %1645 = vst [vmem:[#allocation7 + $0xb8] sm:$0xff] %v1581_v35   ;;  %v662_v38 = vadd.f32 %v1968_v17, %v661_v36  ;;  %v790_v39 = vadd.f32 %v1968_v17, %v789_v37  ;;  %v663_v40 = vpop.f32.mrb[33].mxu0  ;;  %v791_v41 = vpop.f32.mrb[33].mxu1 }
 0x17d   :  { %v664_v42 = vpop.f32.mrb[34].mxu0  ;;  %v792_v43 = vpop.f32.mrb[34].mxu1 }
 0x17e   :  { %v665_v44 = vadd.f32 %v1968_v17, %v664_v42  ;;  %v793_v45 = vadd.f32 %v1968_v17, %v792_v43  ;;  %v666_v46 = vpop.f32.mrb[35].mxu0  ;;  %v794_v47 = vpop.f32.mrb[35].mxu1  ;;  %v868_v48 = vmax.f32 %v662_v38, 0.0  ;;  %v900_v49 = vmax.f32 %v790_v39, 0.0 }
 0x180   :  { %v869_v50 = vmax.f32 %v665_v44, 0.0  ;;  %v901_v51 = vmax.f32 %v793_v45, 0.0 }
 0x182   :  { %v1506_v52 = vpack.c.bf16 %v869_v50, %v868_v48  ;;  %v1586_v53 = vpack.c.bf16 %v901_v51, %v900_v49 }
 0x183   :  { %v669_v54 = vpop.f32.mrb[36].mxu0  ;;  %v797_v55 = vpop.f32.mrb[36].mxu1 }
 0x184   :  { %1630 = vst [vmem:[#allocation7 + $0x40] sm:$0xff] %v1506_v52   ;;  %1646 = vst [vmem:[#allocation7 + $0xc0] sm:$0xff] %v1586_v53   ;;  %v670_v56 = vadd.f32 %v1968_v17, %v669_v54  ;;  %v798_v57 = vadd.f32 %v1968_v17, %v797_v55  ;;  %v671_v58 = vpop.f32.mrb[37].mxu0  ;;  %v799_v59 = vpop.f32.mrb[37].mxu1 }
 0x185   :  { %v672_v60 = vpop.f32.mrb[38].mxu0  ;;  %v800_v61 = vpop.f32.mrb[38].mxu1 }
 0x186   :  { %v673_v62 = vadd.f32 %v1968_v17, %v672_v60  ;;  %v801_v63 = vadd.f32 %v1968_v17, %v800_v61  ;;  %v674_v0 = vpop.f32.mrb[39].mxu0  ;;  %v802_v1 = vpop.f32.mrb[39].mxu1  ;;  %v870_v2 = vmax.f32 %v670_v56, 0.0  ;;  %v902_v3 = vmax.f32 %v798_v57, 0.0 }
 0x188   :  { %v871_v4 = vmax.f32 %v673_v62, 0.0  ;;  %v903_v5 = vmax.f32 %v801_v63, 0.0 }
 0x18a   :  { %v1511_v6 = vpack.c.bf16 %v871_v4, %v870_v2  ;;  %v1591_v7 = vpack.c.bf16 %v903_v5, %v902_v3 }
 0x18b   :  { %v677_v8 = vpop.f32.mrb[40].mxu0  ;;  %v805_v9 = vpop.f32.mrb[40].mxu1 }
 0x18c   :  { %1631 = vst [vmem:[#allocation7 + $0x48] sm:$0xff] %v1511_v6   ;;  %1647 = vst [vmem:[#allocation7 + $0xc8] sm:$0xff] %v1591_v7   ;;  %v678_v10 = vadd.f32 %v1968_v17, %v677_v8  ;;  %v806_v11 = vadd.f32 %v1968_v17, %v805_v9  ;;  %v679_v12 = vpop.f32.mrb[41].mxu0  ;;  %v807_v13 = vpop.f32.mrb[41].mxu1 }
 0x18d   :  { %v680_v14 = vpop.f32.mrb[42].mxu0  ;;  %v808_v15 = vpop.f32.mrb[42].mxu1 }
 0x18e   :  { %v681_v16 = vadd.f32 %v1968_v17, %v680_v14  ;;  %v809_v18 = vadd.f32 %v1968_v17, %v808_v15  ;;  %v682_v19 = vpop.f32.mrb[43].mxu0  ;;  %v810_v20 = vpop.f32.mrb[43].mxu1  ;;  %v872_v21 = vmax.f32 %v678_v10, 0.0  ;;  %v904_v22 = vmax.f32 %v806_v11, 0.0 }
 0x190   :  { %v873_v23 = vmax.f32 %v681_v16, 0.0  ;;  %v905_v24 = vmax.f32 %v809_v18, 0.0 }
 0x192   :  { %v1516_v25 = vpack.c.bf16 %v873_v23, %v872_v21  ;;  %v1596_v26 = vpack.c.bf16 %v905_v24, %v904_v22 }
 0x193   :  { %v685_v27 = vpop.f32.mrb[44].mxu0  ;;  %v813_v28 = vpop.f32.mrb[44].mxu1 }
 0x194   :  { %1632 = vst [vmem:[#allocation7 + $0x50] sm:$0xff] %v1516_v25   ;;  %1648 = vst [vmem:[#allocation7 + $0xd0] sm:$0xff] %v1596_v26   ;;  %v686_v29 = vadd.f32 %v1968_v17, %v685_v27  ;;  %v814_v30 = vadd.f32 %v1968_v17, %v813_v28  ;;  %v687_v31 = vpop.f32.mrb[45].mxu0  ;;  %v815_v32 = vpop.f32.mrb[45].mxu1 }
 0x195   :  { %v688_v33 = vpop.f32.mrb[46].mxu0  ;;  %v816_v34 = vpop.f32.mrb[46].mxu1 }
 0x196   :  { %v689_v35 = vadd.f32 %v1968_v17, %v688_v33  ;;  %v817_v36 = vadd.f32 %v1968_v17, %v816_v34  ;;  %v690_v37 = vpop.f32.mrb[47].mxu0  ;;  %v818_v38 = vpop.f32.mrb[47].mxu1  ;;  %v874_v39 = vmax.f32 %v686_v29, 0.0  ;;  %v906_v40 = vmax.f32 %v814_v30, 0.0 }
 0x198   :  { %v875_v41 = vmax.f32 %v689_v35, 0.0  ;;  %v907_v42 = vmax.f32 %v817_v36, 0.0 }
 0x19a   :  { %v1521_v43 = vpack.c.bf16 %v875_v41, %v874_v39  ;;  %v1601_v44 = vpack.c.bf16 %v907_v42, %v906_v40 }
 0x19b   :  { %v693_v45 = vpop.f32.mrb[48].mxu0  ;;  %v821_v46 = vpop.f32.mrb[48].mxu1 }
 0x19c   :  { %1633 = vst [vmem:[#allocation7 + $0x58] sm:$0xff] %v1521_v43   ;;  %1649 = vst [vmem:[#allocation7 + $0xd8] sm:$0xff] %v1601_v44   ;;  %v694_v47 = vadd.f32 %v1968_v17, %v693_v45  ;;  %v822_v48 = vadd.f32 %v1968_v17, %v821_v46  ;;  %v695_v49 = vpop.f32.mrb[49].mxu0  ;;  %v823_v50 = vpop.f32.mrb[49].mxu1 }
 0x19d   :  { %v696_v51 = vpop.f32.mrb[50].mxu0  ;;  %v824_v52 = vpop.f32.mrb[50].mxu1 }
 0x19e   :  { %v697_v53 = vadd.f32 %v1968_v17, %v696_v51  ;;  %v825_v54 = vadd.f32 %v1968_v17, %v824_v52  ;;  %v698_v55 = vpop.f32.mrb[51].mxu0  ;;  %v826_v56 = vpop.f32.mrb[51].mxu1  ;;  %v876_v57 = vmax.f32 %v694_v47, 0.0  ;;  %v908_v58 = vmax.f32 %v822_v48, 0.0 }
 0x1a0   :  { %v877_v59 = vmax.f32 %v697_v53, 0.0  ;;  %v909_v60 = vmax.f32 %v825_v54, 0.0 }
 0x1a2   :  { %v1526_v61 = vpack.c.bf16 %v877_v59, %v876_v57  ;;  %v1606_v62 = vpack.c.bf16 %v909_v60, %v908_v58 }
 0x1a3   :  { %v701_v63 = vpop.f32.mrb[52].mxu0  ;;  %v829_v0 = vpop.f32.mrb[52].mxu1 }
 0x1a4   :  { %1634 = vst [vmem:[#allocation7 + $0x60] sm:$0xff] %v1526_v61   ;;  %1650 = vst [vmem:[#allocation7 + $0xe0] sm:$0xff] %v1606_v62   ;;  %v702_v1 = vadd.f32 %v1968_v17, %v701_v63  ;;  %v830_v2 = vadd.f32 %v1968_v17, %v829_v0  ;;  %v703_v3 = vpop.f32.mrb[53].mxu0  ;;  %v831_v4 = vpop.f32.mrb[53].mxu1 }
 0x1a5   :  { %v704_v5 = vpop.f32.mrb[54].mxu0  ;;  %v832_v6 = vpop.f32.mrb[54].mxu1 }
 0x1a6   :  { %v705_v7 = vadd.f32 %v1968_v17, %v704_v5  ;;  %v833_v8 = vadd.f32 %v1968_v17, %v832_v6  ;;  %v706_v9 = vpop.f32.mrb[55].mxu0  ;;  %v834_v10 = vpop.f32.mrb[55].mxu1  ;;  %v878_v11 = vmax.f32 %v702_v1, 0.0  ;;  %v910_v12 = vmax.f32 %v830_v2, 0.0 }
 0x1a8   :  { %v879_v13 = vmax.f32 %v705_v7, 0.0  ;;  %v911_v14 = vmax.f32 %v833_v8, 0.0 }
 0x1aa   :  { %v1531_v15 = vpack.c.bf16 %v879_v13, %v878_v11  ;;  %v1611_v16 = vpack.c.bf16 %v911_v14, %v910_v12 }
 0x1ab   :  { %v709_v18 = vpop.f32.mrb[56].mxu0  ;;  %v837_v19 = vpop.f32.mrb[56].mxu1 }
 0x1ac   :  { %1635 = vst [vmem:[#allocation7 + $0x68] sm:$0xff] %v1531_v15   ;;  %1651 = vst [vmem:[#allocation7 + $0xe8] sm:$0xff] %v1611_v16   ;;  %v710_v20 = vadd.f32 %v1968_v17, %v709_v18  ;;  %v838_v21 = vadd.f32 %v1968_v17, %v837_v19  ;;  %v711_v22 = vpop.f32.mrb[57].mxu0  ;;  %v839_v23 = vpop.f32.mrb[57].mxu1 }
 0x1ad   :  { %v712_v24 = vpop.f32.mrb[58].mxu0  ;;  %v840_v25 = vpop.f32.mrb[58].mxu1 }
 0x1ae   :  { %v713_v26 = vadd.f32 %v1968_v17, %v712_v24  ;;  %v841_v27 = vadd.f32 %v1968_v17, %v840_v25  ;;  %v714_v28 = vpop.f32.mrb[59].mxu0  ;;  %v842_v29 = vpop.f32.mrb[59].mxu1  ;;  %v880_v30 = vmax.f32 %v710_v20, 0.0  ;;  %v912_v31 = vmax.f32 %v838_v21, 0.0 }
 0x1b0   :  { %v881_v32 = vmax.f32 %v713_v26, 0.0  ;;  %v913_v33 = vmax.f32 %v841_v27, 0.0 }
 0x1b2   :  { %v1536_v34 = vpack.c.bf16 %v881_v32, %v880_v30  ;;  %v1616_v35 = vpack.c.bf16 %v913_v33, %v912_v31 }
 0x1b3   :  { %v717_v36 = vpop.f32.mrb[60].mxu0  ;;  %v845_v37 = vpop.f32.mrb[60].mxu1 }
 0x1b4   :  { %1636 = vst [vmem:[#allocation7 + $0x70] sm:$0xff] %v1536_v34   ;;  %1652 = vst [vmem:[#allocation7 + $0xf0] sm:$0xff] %v1616_v35   ;;  %v718_v38 = vadd.f32 %v1968_v17, %v717_v36  ;;  %v846_v39 = vadd.f32 %v1968_v17, %v845_v37  ;;  %v719_v40 = vpop.f32.mrb[61].mxu0  ;;  %v847_v41 = vpop.f32.mrb[61].mxu1 }
 0x1b5   :  { %v720_v42 = vpop.f32.mrb[62].mxu0  ;;  %v848_v43 = vpop.f32.mrb[62].mxu1 }
 0x1b6   :  { %v721_v44 = vadd.f32 %v1968_v17, %v720_v42  ;;  %v849_v45 = vadd.f32 %v1968_v17, %v848_v43  ;;  %v722_v46 = vpop.f32.mrb[63].mxu0  ;;  %v850_v47 = vpop.f32.mrb[63].mxu1  ;;  %v882_v48 = vmax.f32 %v718_v38, 0.0  ;;  %v914_v49 = vmax.f32 %v846_v39, 0.0 }
 0x1b8   :  { %v883_v50 = vmax.f32 %v721_v44, 0.0  ;;  %v915_v51 = vmax.f32 %v849_v45, 0.0 }
 0x1ba   :  { %v1541_v52 = vpack.c.bf16 %v883_v50, %v882_v48  ;;  %v1621_v53 = vpack.c.bf16 %v915_v51, %v914_v49 }
 0x1bc   :  { %1637 = vst [vmem:[#allocation7 + $0x78] sm:$0xff] %v1541_v52   ;;  %1653 = vst [vmem:[#allocation7 + $0xf8] sm:$0xff] %v1621_v53  }
 0x1bd   :  { %1861 = shalt.err (!%p1858_p6)
}
 0x1be   :  { %s1862_s17 = scalar_lea.hbm %s2052_s3, 4096 }
 0x1bf   :  { %p1863_p7 = scmp.ne.s32.totalorder %s2052_s3, %s1862_s17  ;;  %p1866_p8 = scmp.lt.u32.totalorder %s1862_s17, %s2052_s3 }
 0x1c1   :  { %p1868_p9 = pnand %p1866_p8, %p1863_p7 }
 0x1c3   :  { %1871 = shalt.err (!%p1868_p9)
}
 0x1c4   :  { %1247 = dma.vmem_to_hbm [thread:$0]  %s1242_s13, 4096, %s2052_s3, [#allocation4], %s1882_s0, %s1882_s0, %s1883_s9  }
 0x1c5   :  { %1876 = dma.done.wait [#allocation4], 4096  }
 0x1c6   :  { %1877 = vsyncadd [#allocation4], 4294963200 }
 0x1c7   :  { %1251 = vsyncpa [#allocation3], 1 }
 0x1c8   :  { %1252 = vsyncpa [#allocation6], 1 }
 0x1c9   :  { %1253 = vsyncpa [#allocation4], 1 }

</bundles_post_ra>
